<compile_context>
chip_gen: v7x
topology: tpu7x:2x2x1
jax: 0.10.0
libtpu: 0.0.40
codegen_flags: <defaults>
</compile_context>

<pallas_src>
import math
import jax
import jax.numpy as jnp
from jax.experimental import pallas as pl
from jax.experimental.pallas import tpu as pltpu


CUTOFF = 5.0            # HardCutoff default
N_HIDDEN_GC_LAYERS = 4  # GC layers 2..5 (layer 1's linear is folded into the embedding gather)


# ----------------------------------------------------------------------------
# Fused Pallas kernel: 5 GC layers + readout MLP + masked per-molecule sum
# ----------------------------------------------------------------------------
def fused_gcn_kernel(a_ref, h0_ref, gcw_ref, gcb_ref,
                     ow1_ref, ob1_ref, ow2_ref, ob2_ref,
                     mask_ref, seg_ref, natoms_ref, out_ref):
    """
    a_ref:      (BN, BN)      block-diagonal masked+cutoff adjacency (0/1)
    h0_ref:     (BN, 128)     embedding already pushed through GC-layer-1 linear
    gcw_ref:    (4, 128, 128) GC layer 2..5 weights (stored (in, out))
    gcb_ref:    (4, 1, 128)   GC layer 2..5 biases
    ow1_ref:    (128, 64)     readout Linear(128,64) weight
    ob1_ref:    (1, 64)       readout Linear(128,64) bias
    ow2_ref:    (1, 64)       readout Linear(64,1) weight as a row
    ob2_ref:    (1, 1)        readout Linear(64,1) bias
    mask_ref:   (BN, 1)       node mask (flattened)
    seg_ref:    (B, BN)       molecule-membership 0/1 matrix (per-molecule pooling)
    natoms_ref: (B, 1)        number of real atoms per molecule
    out_ref:    (B, 1)        per-molecule readout sum
    """
    # Adjacency is 0/1 -> exact in bf16; reused by every layer from vregs/VMEM.
    a = a_ref[...].astype(jnp.bfloat16)

    # ---- GC layer 1: (embedding @ W1 + b1) was folded into h0 in the wrapper ----
    h = jnp.dot(a, h0_ref[...].astype(jnp.bfloat16),
                preferred_element_type=jnp.float32)
    h = h * jax.nn.sigmoid(h)                       # SiLU in f32

    # ---- GC layers 2..5: h <- SiLU( A @ (h W + b) ); h stays on-chip ----
    for l in range(N_HIDDEN_GC_LAYERS):             # static unroll (4 iterations)
        xw = jnp.dot(h.astype(jnp.bfloat16), gcw_ref[l].astype(jnp.bfloat16),
                     preferred_element_type=jnp.float32) + gcb_ref[l]
        agg = jnp.dot(a, xw.astype(jnp.bfloat16),
                      preferred_element_type=jnp.float32)
        h = agg * jax.nn.sigmoid(agg)

    # ---- readout: Linear(128,64) -> SiLU -> Linear(64,1), masked, summed per molecule ----
    h1 = jnp.dot(h.astype(jnp.bfloat16), ow1_ref[...].astype(jnp.bfloat16),
                 preferred_element_type=jnp.float32) + ob1_ref[...]
    h1 = h1 * jax.nn.sigmoid(h1)
    h1 = h1 * mask_ref[...]                         # kill bias leak on padded nodes

    # per-molecule pooling on the MXU: (B, BN) @ (BN, 64) -> (B, 64)
    pooled = jnp.dot(seg_ref[...], h1, preferred_element_type=jnp.float32)

    # Linear(64,1) as a VPU lane reduction; bias contributes once per real atom.
    out_ref[...] = (jnp.sum(pooled * ow2_ref[...], axis=-1, keepdims=True)
                    + ob2_ref[...] * natoms_ref[...])


def gcn_fused_call(adj_bd, h0, gcw, gcb, ow1, ob1, ow2_row, ob2,
                   mask_flat, seg, n_atoms):
    B = seg.shape[0]
    vmem = pl.BlockSpec(memory_space=pltpu.MemorySpace.VMEM)  # whole-array, VMEM resident
    return pl.pallas_call(
        fused_gcn_kernel,
        out_shape=jax.ShapeDtypeStruct((B, 1), jnp.float32),
        in_specs=[vmem] * 11,
        out_specs=vmem,
    )(adj_bd, h0, gcw, gcb, ow1, ob1, ow2_row, ob2, mask_flat, seg, n_atoms)


# ----------------------------------------------------------------------------
# Parameter init (deterministic, matching weight_init semantics)
# ----------------------------------------------------------------------------
def xavier_uniform(key, fan_in, fan_out, gain=0.25):
    bound = gain * math.sqrt(6.0 / (fan_in + fan_out))
    # stored as (in, out) so kernels can do x @ W directly (== torch x @ W.T)
    return jax.random.uniform(key, (fan_in, fan_out), jnp.float32, -bound, bound)


def init_params(key):
    keys = jax.random.split(key, 16)
    params = {}
    params["embedding"] = jax.random.normal(keys[0], (10, 20), jnp.float32)  # nn.Embedding ~ N(0,1)
    gc_dims = [(20, 128), (128, 128), (128, 128), (128, 128), (128, 128)]
    gc_layers = []
    for i, (din, dout) in enumerate(gc_dims):
        w = xavier_uniform(keys[1 + i], din, dout)
        b = jnp.zeros((1, dout), jnp.float32)
        gc_layers.append((w, b))
    params["gc_layers"] = gc_layers
    params["out1_w"] = xavier_uniform(keys[10], 128, 64)
    params["out1_b"] = jnp.zeros((1, 64), jnp.float32)
    params["out2_w"] = xavier_uniform(keys[11], 64, 1)
    params["out2_b"] = jnp.zeros((1, 1), jnp.float32)
    return params


# ----------------------------------------------------------------------------
# Forward pass: adjacency / embedding-fold glue in JAX, everything else fused
# ----------------------------------------------------------------------------
def gcn_forward(params, atomic_numbers, positions, node_mask, u0):
    B, N = atomic_numbers.shape
    BN = B * N
    positions = positions - positions.mean(axis=1, keepdims=True)

    # edge mask = outer product of node masks (includes self-edges, as original)
    edge_mask = node_mask[:, :, None] * node_mask[:, None, :]          # (B, N, N)

    # AtomDistances: pairwise distances, masked entries -> 0
    diff = positions[:, :, None, :] - positions[:, None, :, :]
    dist = jnp.sqrt(jnp.sum(diff * diff, axis=-1))
    dist = dist * edge_mask

    # HardCutoff(d) * edge_mask  -> dense adjacency used by the GC layers
    adj = (dist <= CUTOFF).astype(jnp.float32) * edge_mask             # (B, N, N)

    # Block-diagonal adjacency over the flattened node axis: whole batch becomes
    # one (BN,BN)@(BN,128) matmul per layer on the MXU.
    eye_b = jnp.eye(B, dtype=jnp.float32)
    adj_bd = (eye_b[:, None, :, None] * adj[:, :, None, :]).reshape(BN, BN)
    # TODO(synk): at large B/N build adj (d^2 = |ri|^2+|rj|^2-2 R@R^T) inside the
    # kernel and tile the contraction axis instead of materializing (BN,BN).

    # Fold the 20-dim embedding into GC layer 1: table = E @ W1 + b1, then gather.
    w1, b1 = params["gc_layers"][0]
    table = params["embedding"] @ w1 + b1                              # (10, 128)
    h0 = table[atomic_numbers].reshape(BN, 128)                        # (BN, 128)

    # Stack remaining GC layer weights so the fused kernel keeps them resident.
    gcw = jnp.stack([w for (w, _) in params["gc_layers"][1:]])         # (4, 128, 128)
    gcb = jnp.stack([b for (_, b) in params["gc_layers"][1:]])         # (4, 1, 128)

    mask_flat = node_mask.reshape(BN, 1)
    seg = jnp.repeat(jnp.eye(B, dtype=jnp.float32), N, axis=1)         # (B, BN) membership
    n_atoms = node_mask.sum(axis=1, keepdims=True)                     # (B, 1)

    output = gcn_fused_call(
        adj_bd, h0, gcw, gcb,
        params["out1_w"], params["out1_b"],
        params["out2_w"].T,                                            # (1, 64) row
        params["out2_b"],
        mask_flat, seg, n_atoms,
    )                                                                  # (B, 1)

    loss = jnp.sqrt(jnp.mean((output - u0) ** 2))      # sqrt(MSELoss)
    mae = jnp.mean(jnp.abs(output - u0))               # l1_loss
    return loss, mae


# ----------------------------------------------------------------------------
if __name__ == "__main__":
    key = jax.random.PRNGKey(0)
    k_par, k_z, k_r, k_u = jax.random.split(key, 4)

    B, N = 2, 8
    params = init_params(k_par)

    atomic_numbers = jax.random.randint(k_z, (B, N), 1, 10, dtype=jnp.int32)
    positions = jax.random.uniform(k_r, (B, N, 3), jnp.float32, -1.5, 1.5)
    # molecule 0 has 8 atoms, molecule 1 has 6 (last two padded)
    node_mask = jnp.array(
        [[1, 1, 1, 1, 1, 1, 1, 1],
         [1, 1, 1, 1, 1, 1, 0, 0]], dtype=jnp.float32)
    atomic_numbers = (atomic_numbers * node_mask.astype(jnp.int32)).astype(jnp.int32)
    u0 = jax.random.normal(k_u, (B, 1), jnp.float32)

    loss, mae = jax.jit(gcn_forward)(params, atomic_numbers, positions, node_mask, u0)
    jax.block_until_ready((loss, mae))
    print("KERNEL_OK")
</pallas_src>

<mosaic_0001>
module attributes {stable_mosaic.version = 11 : i64} {
  func.func @fused_gcn_kernel(%arg0: memref<16x16xf32, #tpu.memory_space<vmem>>, %arg1: memref<16x128xf32, #tpu.memory_space<vmem>>, %arg2: memref<4x128x128xf32, #tpu.memory_space<vmem>>, %arg3: memref<4x1x128xf32, #tpu.memory_space<vmem>>, %arg4: memref<128x64xf32, #tpu.memory_space<vmem>>, %arg5: memref<1x64xf32, #tpu.memory_space<vmem>>, %arg6: memref<1x64xf32, #tpu.memory_space<vmem>>, %arg7: memref<1x1xf32, #tpu.memory_space<vmem>>, %arg8: memref<16x1xf32, #tpu.memory_space<vmem>>, %arg9: memref<2x16xf32, #tpu.memory_space<vmem>>, %arg10: memref<2x1xf32, #tpu.memory_space<vmem>>, %arg11: memref<2x1xf32, #tpu.memory_space<vmem>>) attributes {dimension_semantics = [], scalar_prefetch = 0 : i64, scratch_operands = 0 : i64, tpu.core_type = #tpu.core_type<tc>} {
    %c0 = arith.constant 0 : index
    %c0_0 = arith.constant 0 : index
    %0 = vector.load %arg0[%c0, %c0_0] : memref<16x16xf32, #tpu.memory_space<vmem>>, vector<16x16xf32>
    %1 = arith.truncf %0 : vector<16x16xf32> to vector<16x16xbf16>
    %c0_1 = arith.constant 0 : index
    %c0_2 = arith.constant 0 : index
    %2 = vector.load %arg1[%c0_1, %c0_2] : memref<16x128xf32, #tpu.memory_space<vmem>>, vector<16x128xf32>
    %3 = arith.truncf %2 : vector<16x128xf32> to vector<16x128xbf16>
    %cst = arith.constant dense<0.000000e+00> : vector<16x128xf32>
    %4 = tpu.matmul %1, %3, %cst {dimension_numbers = #tpu.dot_dimension_numbers<[1], [0], [0], [1], [0, 0, 1, 1], [], []>} : vector<16x16xbf16>, vector<16x128xbf16>, vector<16x128xf32> -> vector<16x128xf32>
    %5 = arith.negf %4 : vector<16x128xf32>
    %6 = math.exp %5 : vector<16x128xf32>
    %cst_3 = arith.constant 1.000000e+00 : f32
    %7 = vector.broadcast %cst_3 : f32 to vector<16x128xf32>
    %8 = arith.addf %7, %6 : vector<16x128xf32>
    %9 = arith.divf %7, %8 : vector<16x128xf32>
    %10 = arith.mulf %4, %9 : vector<16x128xf32>
    %11 = arith.truncf %10 : vector<16x128xf32> to vector<16x128xbf16>
    %c0_4 = arith.constant 0 : index
    %c0_5 = arith.constant 0 : index
    %c0_6 = arith.constant 0 : index
    %12 = vector.load %arg2[%c0_4, %c0_5, %c0_6] : memref<4x128x128xf32, #tpu.memory_space<vmem>>, vector<1x128x128xf32>
    %13 = vector.shape_cast %12 : vector<1x128x128xf32> to vector<128x128xf32>
    %14 = arith.truncf %13 : vector<128x128xf32> to vector<128x128xbf16>
    %cst_7 = arith.constant dense<0.000000e+00> : vector<16x128xf32>
    %15 = tpu.matmul %11, %14, %cst_7 {dimension_numbers = #tpu.dot_dimension_numbers<[1], [0], [0], [1], [0, 0, 1, 1], [], []>} : vector<16x128xbf16>, vector<128x128xbf16>, vector<16x128xf32> -> vector<16x128xf32>
    %c0_8 = arith.constant 0 : index
    %c0_9 = arith.constant 0 : index
    %c0_10 = arith.constant 0 : index
    %16 = vector.load %arg3[%c0_8, %c0_9, %c0_10] : memref<4x1x128xf32, #tpu.memory_space<vmem>>, vector<1x1x128xf32>
    %17 = vector.shape_cast %16 : vector<1x1x128xf32> to vector<1x128xf32>
    %18 = vector.broadcast %17 : vector<1x128xf32> to vector<16x128xf32>
    %19 = arith.addf %15, %18 : vector<16x128xf32>
    %20 = arith.truncf %19 : vector<16x128xf32> to vector<16x128xbf16>
    %cst_11 = arith.constant dense<0.000000e+00> : vector<16x128xf32>
    %21 = tpu.matmul %1, %20, %cst_11 {dimension_numbers = #tpu.dot_dimension_numbers<[1], [0], [0], [1], [0, 0, 1, 1], [], []>} : vector<16x16xbf16>, vector<16x128xbf16>, vector<16x128xf32> -> vector<16x128xf32>
    %22 = arith.negf %21 : vector<16x128xf32>
    %23 = math.exp %22 : vector<16x128xf32>
    %cst_12 = arith.constant 1.000000e+00 : f32
    %24 = vector.broadcast %cst_12 : f32 to vector<16x128xf32>
    %25 = arith.addf %24, %23 : vector<16x128xf32>
    %26 = arith.divf %24, %25 : vector<16x128xf32>
    %27 = arith.mulf %21, %26 : vector<16x128xf32>
    %28 = arith.truncf %27 : vector<16x128xf32> to vector<16x128xbf16>
    %c1 = arith.constant 1 : index
    %c0_13 = arith.constant 0 : index
    %c0_14 = arith.constant 0 : index
    %29 = vector.load %arg2[%c1, %c0_13, %c0_14] : memref<4x128x128xf32, #tpu.memory_space<vmem>>, vector<1x128x128xf32>
    %30 = vector.shape_cast %29 : vector<1x128x128xf32> to vector<128x128xf32>
    %31 = arith.truncf %30 : vector<128x128xf32> to vector<128x128xbf16>
    %cst_15 = arith.constant dense<0.000000e+00> : vector<16x128xf32>
    %32 = tpu.matmul %28, %31, %cst_15 {dimension_numbers = #tpu.dot_dimension_numbers<[1], [0], [0], [1], [0, 0, 1, 1], [], []>} : vector<16x128xbf16>, vector<128x128xbf16>, vector<16x128xf32> -> vector<16x128xf32>
    %c1_16 = arith.constant 1 : index
    %c0_17 = arith.constant 0 : index
    %c0_18 = arith.constant 0 : index
    %33 = vector.load %arg3[%c1_16, %c0_17, %c0_18] : memref<4x1x128xf32, #tpu.memory_space<vmem>>, vector<1x1x128xf32>
    %34 = vector.shape_cast %33 : vector<1x1x128xf32> to vector<1x128xf32>
    %35 = vector.broadcast %34 : vector<1x128xf32> to vector<16x128xf32>
    %36 = arith.addf %32, %35 : vector<16x128xf32>
    %37 = arith.truncf %36 : vector<16x128xf32> to vector<16x128xbf16>
    %cst_19 = arith.constant dense<0.000000e+00> : vector<16x128xf32>
    %38 = tpu.matmul %1, %37, %cst_19 {dimension_numbers = #tpu.dot_dimension_numbers<[1], [0], [0], [1], [0, 0, 1, 1], [], []>} : vector<16x16xbf16>, vector<16x128xbf16>, vector<16x128xf32> -> vector<16x128xf32>
    %39 = arith.negf %38 : vector<16x128xf32>
    %40 = math.exp %39 : vector<16x128xf32>
    %cst_20 = arith.constant 1.000000e+00 : f32
    %41 = vector.broadcast %cst_20 : f32 to vector<16x128xf32>
    %42 = arith.addf %41, %40 : vector<16x128xf32>
    %43 = arith.divf %41, %42 : vector<16x128xf32>
    %44 = arith.mulf %38, %43 : vector<16x128xf32>
    %45 = arith.truncf %44 : vector<16x128xf32> to vector<16x128xbf16>
    %c2 = arith.constant 2 : index
    %c0_21 = arith.constant 0 : index
    %c0_22 = arith.constant 0 : index
    %46 = vector.load %arg2[%c2, %c0_21, %c0_22] : memref<4x128x128xf32, #tpu.memory_space<vmem>>, vector<1x128x128xf32>
    %47 = vector.shape_cast %46 : vector<1x128x128xf32> to vector<128x128xf32>
    %48 = arith.truncf %47 : vector<128x128xf32> to vector<128x128xbf16>
    %cst_23 = arith.constant dense<0.000000e+00> : vector<16x128xf32>
    %49 = tpu.matmul %45, %48, %cst_23 {dimension_numbers = #tpu.dot_dimension_numbers<[1], [0], [0], [1], [0, 0, 1, 1], [], []>} : vector<16x128xbf16>, vector<128x128xbf16>, vector<16x128xf32> -> vector<16x128xf32>
    %c2_24 = arith.constant 2 : index
    %c0_25 = arith.constant 0 : index
    %c0_26 = arith.constant 0 : index
    %50 = vector.load %arg3[%c2_24, %c0_25, %c0_26] : memref<4x1x128xf32, #tpu.memory_space<vmem>>, vector<1x1x128xf32>
    %51 = vector.shape_cast %50 : vector<1x1x128xf32> to vector<1x128xf32>
    %52 = vector.broadcast %51 : vector<1x128xf32> to vector<16x128xf32>
    %53 = arith.addf %49, %52 : vector<16x128xf32>
    %54 = arith.truncf %53 : vector<16x128xf32> to vector<16x128xbf16>
    %cst_27 = arith.constant dense<0.000000e+00> : vector<16x128xf32>
    %55 = tpu.matmul %1, %54, %cst_27 {dimension_numbers = #tpu.dot_dimension_numbers<[1], [0], [0], [1], [0, 0, 1, 1], [], []>} : vector<16x16xbf16>, vector<16x128xbf16>, vector<16x128xf32> -> vector<16x128xf32>
    %56 = arith.negf %55 : vector<16x128xf32>
    %57 = math.exp %56 : vector<16x128xf32>
    %cst_28 = arith.constant 1.000000e+00 : f32
    %58 = vector.broadcast %cst_28 : f32 to vector<16x128xf32>
    %59 = arith.addf %58, %57 : vector<16x128xf32>
    %60 = arith.divf %58, %59 : vector<16x128xf32>
    %61 = arith.mulf %55, %60 : vector<16x128xf32>
    %62 = arith.truncf %61 : vector<16x128xf32> to vector<16x128xbf16>
    %c3 = arith.constant 3 : index
    %c0_29 = arith.constant 0 : index
    %c0_30 = arith.constant 0 : index
    %63 = vector.load %arg2[%c3, %c0_29, %c0_30] : memref<4x128x128xf32, #tpu.memory_space<vmem>>, vector<1x128x128xf32>
    %64 = vector.shape_cast %63 : vector<1x128x128xf32> to vector<128x128xf32>
    %65 = arith.truncf %64 : vector<128x128xf32> to vector<128x128xbf16>
    %cst_31 = arith.constant dense<0.000000e+00> : vector<16x128xf32>
    %66 = tpu.matmul %62, %65, %cst_31 {dimension_numbers = #tpu.dot_dimension_numbers<[1], [0], [0], [1], [0, 0, 1, 1], [], []>} : vector<16x128xbf16>, vector<128x128xbf16>, vector<16x128xf32> -> vector<16x128xf32>
    %c3_32 = arith.constant 3 : index
    %c0_33 = arith.constant 0 : index
    %c0_34 = arith.constant 0 : index
    %67 = vector.load %arg3[%c3_32, %c0_33, %c0_34] : memref<4x1x128xf32, #tpu.memory_space<vmem>>, vector<1x1x128xf32>
    %68 = vector.shape_cast %67 : vector<1x1x128xf32> to vector<1x128xf32>
    %69 = vector.broadcast %68 : vector<1x128xf32> to vector<16x128xf32>
    %70 = arith.addf %66, %69 : vector<16x128xf32>
    %71 = arith.truncf %70 : vector<16x128xf32> to vector<16x128xbf16>
    %cst_35 = arith.constant dense<0.000000e+00> : vector<16x128xf32>
    %72 = tpu.matmul %1, %71, %cst_35 {dimension_numbers = #tpu.dot_dimension_numbers<[1], [0], [0], [1], [0, 0, 1, 1], [], []>} : vector<16x16xbf16>, vector<16x128xbf16>, vector<16x128xf32> -> vector<16x128xf32>
    %73 = arith.negf %72 : vector<16x128xf32>
    %74 = math.exp %73 : vector<16x128xf32>
    %cst_36 = arith.constant 1.000000e+00 : f32
    %75 = vector.broadcast %cst_36 : f32 to vector<16x128xf32>
    %76 = arith.addf %75, %74 : vector<16x128xf32>
    %77 = arith.divf %75, %76 : vector<16x128xf32>
    %78 = arith.mulf %72, %77 : vector<16x128xf32>
    %79 = arith.truncf %78 : vector<16x128xf32> to vector<16x128xbf16>
    %c0_37 = arith.constant 0 : index
    %c0_38 = arith.constant 0 : index
    %80 = vector.load %arg4[%c0_37, %c0_38] : memref<128x64xf32, #tpu.memory_space<vmem>>, vector<128x64xf32>
    %81 = arith.truncf %80 : vector<128x64xf32> to vector<128x64xbf16>
    %cst_39 = arith.constant dense<0.000000e+00> : vector<16x64xf32>
    %82 = tpu.matmul %79, %81, %cst_39 {dimension_numbers = #tpu.dot_dimension_numbers<[1], [0], [0], [1], [0, 0, 1, 1], [], []>} : vector<16x128xbf16>, vector<128x64xbf16>, vector<16x64xf32> -> vector<16x64xf32>
    %c0_40 = arith.constant 0 : index
    %c0_41 = arith.constant 0 : index
    %83 = vector.load %arg5[%c0_40, %c0_41] : memref<1x64xf32, #tpu.memory_space<vmem>>, vector<1x64xf32>
    %84 = vector.broadcast %83 : vector<1x64xf32> to vector<16x64xf32>
    %85 = arith.addf %82, %84 : vector<16x64xf32>
    %86 = arith.negf %85 : vector<16x64xf32>
    %87 = math.exp %86 : vector<16x64xf32>
    %cst_42 = arith.constant 1.000000e+00 : f32
    %88 = vector.broadcast %cst_42 : f32 to vector<16x64xf32>
    %89 = arith.addf %88, %87 : vector<16x64xf32>
    %90 = arith.divf %88, %89 : vector<16x64xf32>
    %91 = arith.mulf %85, %90 : vector<16x64xf32>
    %c0_43 = arith.constant 0 : index
    %c0_44 = arith.constant 0 : index
    %92 = vector.load %arg8[%c0_43, %c0_44] : memref<16x1xf32, #tpu.memory_space<vmem>>, vector<16x1xf32>
    %93 = vector.broadcast %92 : vector<16x1xf32> to vector<16x64xf32>
    %94 = arith.mulf %91, %93 : vector<16x64xf32>
    %c0_45 = arith.constant 0 : index
    %c0_46 = arith.constant 0 : index
    %95 = vector.load %arg9[%c0_45, %c0_46] : memref<2x16xf32, #tpu.memory_space<vmem>>, vector<2x16xf32>
    %cst_47 = arith.constant dense<0.000000e+00> : vector<2x64xf32>
    %96 = tpu.matmul %95, %94, %cst_47 {dimension_numbers = #tpu.dot_dimension_numbers<[1], [0], [0], [1], [0, 0, 1, 1], [], []>} : vector<2x16xf32>, vector<16x64xf32>, vector<2x64xf32> -> vector<2x64xf32>
    %c0_48 = arith.constant 0 : index
    %c0_49 = arith.constant 0 : index
    %97 = vector.load %arg6[%c0_48, %c0_49] : memref<1x64xf32, #tpu.memory_space<vmem>>, vector<1x64xf32>
    %98 = vector.broadcast %97 : vector<1x64xf32> to vector<2x64xf32>
    %99 = arith.mulf %96, %98 : vector<2x64xf32>
    %cst_50 = arith.constant dense<0.000000e+00> : vector<2xf32>
    %100 = vector.multi_reduction <add>, %99, %cst_50 [1] : vector<2x64xf32> to vector<2xf32>
    %101 = vector.shape_cast %100 : vector<2xf32> to vector<2x1xf32>
    %c0_51 = arith.constant 0 : index
    %c0_52 = arith.constant 0 : index
    %102 = vector.load %arg7[%c0_51, %c0_52] : memref<1x1xf32, #tpu.memory_space<vmem>>, vector<1x1xf32>
    %c0_53 = arith.constant 0 : index
    %c0_54 = arith.constant 0 : index
    %103 = vector.load %arg10[%c0_53, %c0_54] : memref<2x1xf32, #tpu.memory_space<vmem>>, vector<2x1xf32>
    %104 = vector.broadcast %102 : vector<1x1xf32> to vector<2x1xf32>
    %105 = arith.mulf %104, %103 : vector<2x1xf32>
    %106 = arith.addf %101, %105 : vector<2x1xf32>
    %c0_55 = arith.constant 0 : index
    %c0_56 = arith.constant 0 : index
    %107 = vector.load %arg11[%c0_55, %c0_56] : memref<2x1xf32, #tpu.memory_space<vmem>>, vector<2x1xf32>
    tpu.vector_store %arg11[%c0_55, %c0_56], %106 {strides = array<i32>} : memref<2x1xf32, #tpu.memory_space<vmem>>, vector<2x1xf32>,
    return
  }
}

</mosaic_0001>

<bundles_post_ra>
// kernel: gcn_forward.1
= control target key start
LH: loop header
LB: loop body
LE: loop exit
PB: predicated region body
PF: predicated region fallthrough
CT: control target
= control target key end

     0   :  { %v1158_v0 = vmov 0.0   ;;  %vm1159_vm0 = vmmov 0   ;;  %vm47_vm1 = vcmask 130048   ;;  %vm811_vm2 = vcmask 517120   ;;  %s1590_s1 = inlined_call_operand.vmem [shape: f32[16,128], index: 1, kind: input, shape index: {}]   ;;  %s1591_s0 = inlined_call_operand.vmem [shape: f32[16,16], index: 0, kind: input, shape index: {}]   ;;  %s1592_s2 = inlined_call_operand.vmem [shape: f32[4,128,128], index: 2, kind: input, shape index: {}]   ;;  %s1593_s3 = inlined_call_operand.vmem [shape: f32[4,1,128], index: 3, kind: input, shape index: {}]   ;;  %s1594_s4 = inlined_call_operand.vmem [shape: f32[128,64], index: 4, kind: input, shape index: {}]   ;;  %s1595_s8 = inlined_call_operand.vmem [shape: f32[16,1], index: 8, kind: input, shape index: {}]   ;;  %s1596_s5 = inlined_call_operand.vmem [shape: f32[1,64], index: 5, kind: input, shape index: {}]   ;;  %s1597_s9 = inlined_call_operand.vmem [shape: f32[2,16], index: 9, kind: input, shape index: {}]   ;;  %s1598_s7 = inlined_call_operand.<no memory space> [shape: f32[1,1], index: 7, kind: input, shape index: {}]   ;;  %s1599_s6 = inlined_call_operand.vmem [shape: f32[1,64], index: 6, kind: input, shape index: {}]   ;;  %s1600_s10 = inlined_call_operand.vmem [shape: f32[2,1], index: 10, kind: input, shape index: {}]   ;;  %s1601_s11 = inlined_call_operand.vmem [shape: f32[2,1], index: 11, kind: output, shape index: {}]  }
   0x1   :  { %965 = vmatprep.subr.bf16.mxu0 %v1158_v0  ;;  %v44_v1 = vld [vmem:[%s1590_s1] sm:$0xff]  ;;  %v45_v2 = vld [vmem:[%s1590_s1 + $0x8] sm:$0xff]  ;;  %967 = vmatprep.mubr.msk.bf16.mxu0 %vm1159_vm0, %v1158_v0  ;;  %v109_v10 = vld [vmem:[%s1592_s2 + $0x10] sm:$0xff]  ;;  %vm825_vm3 = vcmask 1024  }
   0x2   :  { %v41_v3 = vld [vmem:[%s1591_s0] sm:$0xff]  ;;  %v46_v4 = vpack.c.bf16 %v45_v2, %v44_v1  ;;  %v42_v5 = vld [vmem:[%s1591_s0 + $0x8] sm:$0xff]  ;;  %971 = vmatprep.subr.bf16.mxu1 %v1158_v0  ;;  %987 = vmatprep.mubr.msk.bf16.mxu1 %vm1159_vm0, %v1158_v0  ;;  %v110_v11 = vld [vmem:[%s1592_s2 + $0x18] sm:$0xff] }
   0x3   :  { %v1240_v6 = vpack.c.bf16 %v42_v5, %v41_v3  ;;  %v107_v7 = vld [vmem:[%s1592_s2] sm:$0xff]  ;;  %v108_v8 = vld [vmem:[%s1592_s2 + $0x8] sm:$0xff]  ;;  %v124_v12 = vpack.c.bf16 %v110_v11, %v109_v10  ;;  %v113_v16 = vld [vmem:[%s1592_s2 + $0x30] sm:$0xff] }
   0x4   :  { %966 = vmatpush3.bf16.msra.mxu0 %v46_v4  ;;  %v123_v9 = vpack.c.bf16 %v108_v8, %v107_v7  ;;  %v111_v13 = vld [vmem:[%s1592_s2 + $0x20] sm:$0xff]  ;;  %v112_v14 = vld [vmem:[%s1592_s2 + $0x28] sm:$0xff]  ;;  %v114_v17 = vld [vmem:[%s1592_s2 + $0x38] sm:$0xff] }
   0x5   :  { %991 = vmatprep.subr.bf16.mxu0 %v1158_v0  ;;  %v125_v15 = vpack.c.bf16 %v112_v14, %v111_v13  ;;  %v126_v18 = vpack.c.bf16 %v114_v17, %v113_v16  ;;  %v115_v19 = vld [vmem:[%s1592_s2 + $0x40] sm:$0xff]  ;;  %v116_v20 = vld [vmem:[%s1592_s2 + $0x48] sm:$0xff]  ;;  %v117_v22 = vld [vmem:[%s1592_s2 + $0x50] sm:$0xff] }
   0x6   :  { %972 = vmatpush3.bf16.msra.mxu1 %v123_v9  ;;  %v127_v21 = vpack.c.bf16 %v116_v20, %v115_v19  ;;  %v118_v23 = vld [vmem:[%s1592_s2 + $0x58] sm:$0xff]  ;;  %v119_v25 = vld [vmem:[%s1592_s2 + $0x60] sm:$0xff]  ;;  %v120_v26 = vld [vmem:[%s1592_s2 + $0x68] sm:$0xff] }
   0x7   :  { %968 = vmatmul.mubr.msk.bf16.vlgmr.msra.gmra.mrb[0].mxu0 %vm47_vm1, %v1240_v6  ;;  %973 = vmatprep.subr.bf16.mxu1 %v1158_v0  ;;  %v128_v24 = vpack.c.bf16 %v118_v23, %v117_v22  ;;  %v129_v27 = vpack.c.bf16 %v120_v26, %v119_v25  ;;  %v121_v28 = vld [vmem:[%s1592_s2 + $0x70] sm:$0xff]  ;;  %v122_v29 = vld [vmem:[%s1592_s2 + $0x78] sm:$0xff]  ;;  %v834_v46 = vld [vmem:[%s1593_s3] ss:$0 sm:$0xff] }
   0x8   :  { %993 = vmatprep.mubr.msk.bf16.mxu0 %vm1159_vm0, %v1158_v0  ;;  %v130_v30 = vpack.c.bf16 %v122_v29, %v121_v28  ;;  %v838_v54 = vld [vmem:[%s1592_s2 + $0x80] sm:$0xff]  ;;  %v839_v55 = vld [vmem:[%s1592_s2 + $0x88] sm:$0xff]  ;;  %v840_v57 = vld [vmem:[%s1592_s2 + $0x90] sm:$0xff] }
   0x9   :  { %v253_v56 = vpack.c.bf16 %v839_v55, %v838_v54  ;;  %v841_v58 = vld [vmem:[%s1592_s2 + $0x98] sm:$0xff]  ;;  %v842_v60 = vld [vmem:[%s1592_s2 + $0xa0] sm:$0xff]  ;;  %v843_v61 = vld [vmem:[%s1592_s2 + $0xa8] sm:$0xff] }
   0xa   :  { %974 = vmatpush3.bf16.msra.mxu1 %v124_v12  ;;  %v254_v59 = vpack.c.bf16 %v841_v58, %v840_v57  ;;  %v255_v62 = vpack.c.bf16 %v843_v61, %v842_v60  ;;  %v844_v63 = vld [vmem:[%s1592_s2 + $0xb0] sm:$0xff]  ;;  %v845_v1 = vld [vmem:[%s1592_s2 + $0xb8] sm:$0xff]  ;;  %v846_v3 = vld [vmem:[%s1592_s2 + $0xc0] sm:$0xff] }
   0xb   :  { %975 = vmatprep.subr.bf16.mxu1 %v1158_v0  ;;  %v256_v2 = vpack.c.bf16 %v845_v1, %v844_v63  ;;  %v847_v4 = vld [vmem:[%s1592_s2 + $0xc8] sm:$0xff]  ;;  %v848_v7 = vld [vmem:[%s1592_s2 + $0xd0] sm:$0xff]  ;;  %v849_v8 = vld [vmem:[%s1592_s2 + $0xd8] sm:$0xff] }
   0xc   :  { %v257_v5 = vpack.c.bf16 %v847_v4, %v846_v3  ;;  %v258_v9 = vpack.c.bf16 %v849_v8, %v848_v7  ;;  %v850_v10 = vld [vmem:[%s1592_s2 + $0xe0] sm:$0xff]  ;;  %v851_v11 = vld [vmem:[%s1592_s2 + $0xe8] sm:$0xff]  ;;  %v852_v13 = vld [vmem:[%s1592_s2 + $0xf0] sm:$0xff] }
   0xd   :  { %v259_v12 = vpack.c.bf16 %v851_v11, %v850_v10  ;;  %v853_v14 = vld [vmem:[%s1592_s2 + $0xf8] sm:$0xff]  ;;  %v869_v54 = vld [vmem:[%s1592_s2 + $0x150] sm:$0xff]  ;;  %v871_v57 = vld [vmem:[%s1592_s2 + $0x160] sm:$0xff] }
   0xe   :  { %976 = vmatpush3.bf16.msra.mxu1 %v125_v15  ;;  %v260_v15 = vpack.c.bf16 %v853_v14, %v852_v13  ;;  %v870_v55 = vld [vmem:[%s1592_s2 + $0x158] sm:$0xff]  ;;  %v872_v58 = vld [vmem:[%s1592_s2 + $0x168] sm:$0xff]  ;;  %v873_v60 = vld [vmem:[%s1592_s2 + $0x170] sm:$0xff] }
   0xf   :  { %977 = vmatprep.subr.bf16.mxu1 %v1158_v0  ;;  %v874_v61 = vld [vmem:[%s1592_s2 + $0x178] sm:$0xff] }
  0x12   :  { %978 = vmatpush3.bf16.msra.mxu1 %v126_v18 }
  0x13   :  { %979 = vmatprep.subr.bf16.mxu1 %v1158_v0 }
  0x16   :  { %980 = vmatpush3.bf16.msra.mxu1 %v127_v21 }
  0x17   :  { %981 = vmatprep.subr.bf16.mxu1 %v1158_v0 }
  0x1a   :  { %982 = vmatpush3.bf16.msra.mxu1 %v128_v24 }
  0x1b   :  { %983 = vmatprep.subr.bf16.mxu1 %v1158_v0 }
  0x1e   :  { %984 = vmatpush3.bf16.msra.mxu1 %v129_v27 }
  0x1f   :  { %985 = vmatprep.subr.bf16.mxu1 %v1158_v0 }
  0x22   :  { %986 = vmatpush3.bf16.msra.mxu1 %v130_v30 }
  0x23   :  { %1023 = vmatprep.subr.bf16.mxu1 %v1158_v0 }
  0xda   :  { %v85_v31 = vpop.f32.mrb[0].mxu0 }
  0xdb   :  { %v832_v32 = vmul.f32 -1.442695, %v85_v31  ;;  %v969_v33 = vpop.f32.mrb[1].mxu0 }
  0xdc   :  { %v88_v34 = vpop.f32.mrb[2].mxu0 }
  0xdd   :  { %1110 = vpow2.f32 %v832_v32  ;;  %v833_v35 = vmul.f32 -1.442695, %v88_v34  ;;  %v970_v36 = vpop.f32.mrb[3].mxu0 }
  0xdf   :  { %1112 = vpow2.f32 %v833_v35 }
  0xe7   :  { %v1111_v37 = vpop.eup %1110 }
  0xe8   :  { %v98_v38 = vadd.f32 1.0, %v1111_v37 }
  0xe9   :  { %v1113_v39 = vpop.eup %1112 }
  0xea   :  { %1114 = vrcp.f32 %v98_v38  ;;  %v99_v40 = vadd.f32 1.0, %v1113_v39  ;;  %v859_v39 = vld [vmem:[%s1592_s2 + $0x100] sm:$0xff] }
  0xec   :  { %1116 = vrcp.f32 %v99_v40  ;;  %v860_v40 = vld [vmem:[%s1592_s2 + $0x108] sm:$0xff] }
  0xf4   :  { %v1115_v41 = vpop.eup %1114 }
  0xf5   :  { %v104_v43 = vmul.f32 %v1115_v41, %v85_v31  ;;  %v855_v31 = vld [vmem:[%s1593_s3 + $0x1] ss:$0 sm:$0xff]  ;;  %v384_v41 = vpack.c.bf16 %v860_v40, %v859_v39  ;;  %v890_v39 = vld [vmem:[%s1592_s2 + $0x1d0] sm:$0xff]  ;;  %v891_v40 = vld [vmem:[%s1592_s2 + $0x1d8] sm:$0xff] }
  0xf6   :  { %v1117_v42 = vpop.eup %1116 }
  0xf7   :  { %v105_v44 = vmul.f32 %v1117_v42, %v88_v34  ;;  %v861_v42 = vld [vmem:[%s1592_s2 + $0x110] sm:$0xff] }
  0xf9   :  { %v106_v45 = vpack.c.bf16 %v105_v44, %v104_v43  ;;  %v862_v43 = vld [vmem:[%s1592_s2 + $0x118] sm:$0xff] }
  0xfa   :  { %v385_v44 = vpack.c.bf16 %v862_v43, %v861_v42  ;;  %v892_v42 = vld [vmem:[%s1592_s2 + $0x1e0] sm:$0xff]  ;;  %v893_v43 = vld [vmem:[%s1592_s2 + $0x1e8] sm:$0xff] }
  0xfb   :  { %988 = vmatmul.mubr.bf16.vlgmr.msra.gmra.mrb[0].mxu1 %v106_v45  ;;  %v863_v45 = vld [vmem:[%s1592_s2 + $0x120] sm:$0xff] }
  0xfc   :  { %1039 = vmatprep.mubr.msk.bf16.mxu1 %vm1159_vm0, %v1158_v0  ;;  %1024 = vmatpush3.bf16.msra.mxu1 %v384_v41  ;;  %v520_v41 = vpack.c.bf16 %v891_v40, %v890_v39 }
  0xfd   :  { %1025 = vmatprep.subr.bf16.mxu1 %v1158_v0 }
 0x100   :  { %1026 = vmatpush3.bf16.msra.mxu1 %v385_v44  ;;  %v521_v44 = vpack.c.bf16 %v893_v43, %v892_v42 }
 0x101   :  { %1027 = vmatprep.subr.bf16.mxu1 %v1158_v0 }
 0x1ce   :  { %v172_v47 = vpop.f32.mrb[0].mxu1 }
 0x1cf   :  { %v989_v48 = vpop.f32.mrb[1].mxu1  ;;  %v173_v50 = vadd.f32 %v834_v46, %v172_v47 }
 0x1d0   :  { %v175_v49 = vpop.f32.mrb[2].mxu1  ;;  %v865_v48 = vld [vmem:[%s1592_s2 + $0x130] sm:$0xff] }
 0x1d1   :  { %v176_v51 = vadd.f32 %v834_v46, %v175_v49  ;;  %v990_v52 = vpop.f32.mrb[3].mxu1  ;;  %v864_v46 = vld [vmem:[%s1592_s2 + $0x128] sm:$0xff]  ;;  %v866_v49 = vld [vmem:[%s1592_s2 + $0x138] sm:$0xff] }
 0x1d2   :  { %v386_v47 = vpack.c.bf16 %v864_v46, %v863_v45  ;;  %v868_v52 = vld [vmem:[%s1592_s2 + $0x148] sm:$0xff]  ;;  %v894_v45 = vld [vmem:[%s1592_s2 + $0x1f0] sm:$0xff]  ;;  %v895_v46 = vld [vmem:[%s1592_s2 + $0x1f8] sm:$0xff] }
 0x1d3   :  { %v179_v53 = vpack.c.bf16 %v176_v51, %v173_v50  ;;  %v387_v50 = vpack.c.bf16 %v866_v49, %v865_v48  ;;  %v867_v51 = vld [vmem:[%s1592_s2 + $0x140] sm:$0xff] }
 0x1d4   :  { %1028 = vmatpush3.bf16.msra.mxu1 %v386_v47  ;;  %v522_v47 = vpack.c.bf16 %v895_v46, %v894_v45 }
 0x1d5   :  { %992 = vmatpush3.bf16.msra.mxu0 %v179_v53  ;;  %1029 = vmatprep.subr.bf16.mxu1 %v1158_v0  ;;  %v388_v53 = vpack.c.bf16 %v868_v52, %v867_v51 }
 0x1d6   :  { %997 = vmatprep.subr.bf16.mxu0 %v1158_v0 }
 0x1d8   :  { %994 = vmatmul.mubr.msk.bf16.vlgmr.msra.gmra.mrb[4].mxu0 %vm47_vm1, %v1240_v6  ;;  %1030 = vmatpush3.bf16.msra.mxu1 %v387_v50 }
 0x1d9   :  { %1013 = vmatprep.mubr.msk.bf16.mxu0 %vm1159_vm0, %v1158_v0  ;;  %998 = vmatpush3.bf16.msra.mxu0 %v253_v56  ;;  %v389_v56 = vpack.c.bf16 %v870_v55, %v869_v54 }
 0x1da   :  { %999 = vmatprep.subr.bf16.mxu0 %v1158_v0  ;;  %1031 = vmatprep.subr.bf16.mxu1 %v1158_v0 }
 0x1dc   :  { %1032 = vmatpush3.bf16.msra.mxu1 %v388_v53 }
 0x1dd   :  { %1000 = vmatpush3.bf16.msra.mxu0 %v254_v59  ;;  %1033 = vmatprep.subr.bf16.mxu1 %v1158_v0  ;;  %v390_v59 = vpack.c.bf16 %v872_v58, %v871_v57 }
 0x1de   :  { %1001 = vmatprep.subr.bf16.mxu0 %v1158_v0 }
 0x1e0   :  { %1034 = vmatpush3.bf16.msra.mxu1 %v389_v56 }
 0x1e1   :  { %1002 = vmatpush3.bf16.msra.mxu0 %v255_v62  ;;  %1035 = vmatprep.subr.bf16.mxu1 %v1158_v0  ;;  %v391_v62 = vpack.c.bf16 %v874_v61, %v873_v60 }
 0x1e2   :  { %1003 = vmatprep.subr.bf16.mxu0 %v1158_v0 }
 0x1e4   :  { %1036 = vmatpush3.bf16.msra.mxu1 %v390_v59 }
 0x1e5   :  { %1004 = vmatpush3.bf16.msra.mxu0 %v256_v2  ;;  %1037 = vmatprep.subr.bf16.mxu1 %v1158_v0 }
 0x1e6   :  { %1005 = vmatprep.subr.bf16.mxu0 %v1158_v0 }
 0x1e8   :  { %1038 = vmatpush3.bf16.msra.mxu1 %v391_v62 }
 0x1e9   :  { %1006 = vmatpush3.bf16.msra.mxu0 %v257_v5  ;;  %1069 = vmatprep.subr.bf16.mxu1 %v1158_v0 }
 0x1ea   :  { %1007 = vmatprep.subr.bf16.mxu0 %v1158_v0 }
 0x1ed   :  { %1008 = vmatpush3.bf16.msra.mxu0 %v258_v9 }
 0x1ee   :  { %1009 = vmatprep.subr.bf16.mxu0 %v1158_v0 }
 0x1f1   :  { %1010 = vmatpush3.bf16.msra.mxu0 %v259_v12 }
 0x1f2   :  { %1011 = vmatprep.subr.bf16.mxu0 %v1158_v0 }
 0x1f5   :  { %1012 = vmatpush3.bf16.msra.mxu0 %v260_v15 }
 0x1f6   :  { %1017 = vmatprep.subr.bf16.mxu0 %v1158_v0 }
 0x2ab   :  { %v214_v16 = vpop.f32.mrb[4].mxu0 }
 0x2ac   :  { %v836_v17 = vmul.f32 -1.442695, %v214_v16  ;;  %v995_v18 = vpop.f32.mrb[5].mxu0 }
 0x2ad   :  { %v217_v19 = vpop.f32.mrb[6].mxu0 }
 0x2ae   :  { %1118 = vpow2.f32 %v836_v17  ;;  %v837_v20 = vmul.f32 -1.442695, %v217_v19  ;;  %v996_v21 = vpop.f32.mrb[7].mxu0 }
 0x2b0   :  { %1120 = vpow2.f32 %v837_v20 }
 0x2b8   :  { %v1119_v22 = vpop.eup %1118 }
 0x2b9   :  { %v227_v23 = vadd.f32 1.0, %v1119_v22 }
 0x2ba   :  { %v1121_v24 = vpop.eup %1120 }
 0x2bb   :  { %1122 = vrcp.f32 %v227_v23  ;;  %v228_v25 = vadd.f32 1.0, %v1121_v24  ;;  %v880_v24 = vld [vmem:[%s1592_s2 + $0x180] sm:$0xff] }
 0x2bd   :  { %1124 = vrcp.f32 %v228_v25  ;;  %v881_v25 = vld [vmem:[%s1592_s2 + $0x188] sm:$0xff] }
 0x2c5   :  { %v1123_v26 = vpop.eup %1122 }
 0x2c6   :  { %v233_v28 = vmul.f32 %v1123_v26, %v214_v16  ;;  %v876_v16 = vld [vmem:[%s1593_s3 + $0x2] ss:$0 sm:$0xff]  ;;  %v515_v26 = vpack.c.bf16 %v881_v25, %v880_v24  ;;  %v640_v24 = vld [vmem:[%s1594_s4 + $0x58] sm:$0xff] }
 0x2c7   :  { %v1125_v27 = vpop.eup %1124 }
 0x2c8   :  { %v234_v29 = vmul.f32 %v1125_v27, %v217_v19  ;;  %v882_v27 = vld [vmem:[%s1592_s2 + $0x190] sm:$0xff] }
 0x2ca   :  { %v235_v30 = vpack.c.bf16 %v234_v29, %v233_v28  ;;  %v883_v28 = vld [vmem:[%s1592_s2 + $0x198] sm:$0xff] }
 0x2cb   :  { %v516_v29 = vpack.c.bf16 %v883_v28, %v882_v27  ;;  %v642_v27 = vld [vmem:[%s1594_s4 + $0x68] sm:$0xff] }
 0x2cc   :  { %1014 = vmatmul.mubr.bf16.vlgmr.msra.gmra.mrb[8].mxu0 %v235_v30  ;;  %v884_v30 = vld [vmem:[%s1592_s2 + $0x1a0] sm:$0xff] }
 0x2cd   :  { %1019 = vmatprep.mubr.msk.bf16.mxu0 %vm1159_vm0, %v1158_v0 }
 0x39f   :  { %v303_v32 = vpop.f32.mrb[8].mxu0 }
 0x3a0   :  { %v1015_v33 = vpop.f32.mrb[9].mxu0  ;;  %v304_v35 = vadd.f32 %v855_v31, %v303_v32 }
 0x3a1   :  { %v306_v34 = vpop.f32.mrb[10].mxu0  ;;  %v886_v33 = vld [vmem:[%s1592_s2 + $0x1b0] sm:$0xff] }
 0x3a2   :  { %v307_v36 = vadd.f32 %v855_v31, %v306_v34  ;;  %v1016_v37 = vpop.f32.mrb[11].mxu0  ;;  %v885_v31 = vld [vmem:[%s1592_s2 + $0x1a8] sm:$0xff]  ;;  %v887_v34 = vld [vmem:[%s1592_s2 + $0x1b8] sm:$0xff] }
 0x3a3   :  { %v517_v32 = vpack.c.bf16 %v885_v31, %v884_v30  ;;  %v889_v37 = vld [vmem:[%s1592_s2 + $0x1c8] sm:$0xff]  ;;  %v644_v30 = vld [vmem:[%s1594_s4 + $0x78] sm:$0xff] }
 0x3a4   :  { %v310_v38 = vpack.c.bf16 %v307_v36, %v304_v35  ;;  %v518_v35 = vpack.c.bf16 %v887_v34, %v886_v33  ;;  %v888_v36 = vld [vmem:[%s1592_s2 + $0x1c0] sm:$0xff] }
 0x3a5   :  { %v715_v33 = vld [vmem:[%s1595_s8] sm:$0xff] }
 0x3a6   :  { %1018 = vmatpush3.bf16.msra.mxu0 %v310_v38  ;;  %v519_v38 = vpack.c.bf16 %v889_v37, %v888_v36 }
 0x3a7   :  { %1043 = vmatprep.subr.bf16.mxu0 %v1158_v0 }
 0x3a9   :  { %1020 = vmatmul.mubr.msk.bf16.vlgmr.msra.gmra.mrb[12].mxu0 %vm47_vm1, %v1240_v6 }
 0x3aa   :  { %1045 = vmatprep.mubr.msk.bf16.mxu0 %vm1159_vm0, %v1158_v0 }
 0x47c   :  { %v345_v63 = vpop.f32.mrb[12].mxu0 }
 0x47d   :  { %v857_v1 = vmul.f32 -1.442695, %v345_v63  ;;  %v1021_v2 = vpop.f32.mrb[13].mxu0 }
 0x47e   :  { %v348_v3 = vpop.f32.mrb[14].mxu0 }
 0x47f   :  { %1126 = vpow2.f32 %v857_v1  ;;  %v858_v4 = vmul.f32 -1.442695, %v348_v3  ;;  %v1022_v5 = vpop.f32.mrb[15].mxu0 }
 0x481   :  { %1128 = vpow2.f32 %v858_v4 }
 0x489   :  { %v1127_v7 = vpop.eup %1126 }
 0x48a   :  { %v358_v8 = vadd.f32 1.0, %v1127_v7 }
 0x48b   :  { %v1129_v9 = vpop.eup %1128 }
 0x48c   :  { %1130 = vrcp.f32 %v358_v8  ;;  %v359_v10 = vadd.f32 1.0, %v1129_v9  ;;  %v629_v9 = vld [vmem:[%s1594_s4] sm:$0xff] }
 0x48e   :  { %1132 = vrcp.f32 %v359_v10  ;;  %v630_v10 = vld [vmem:[%s1594_s4 + $0x8] sm:$0xff] }
 0x496   :  { %v1131_v11 = vpop.eup %1130 }
 0x497   :  { %v364_v13 = vmul.f32 %v1131_v11, %v345_v63  ;;  %v897_v63 = vld [vmem:[%s1593_s3 + $0x3] ss:$0 sm:$0xff]  ;;  %v645_v11 = vpack.c.bf16 %v630_v10, %v629_v9  ;;  %v729_v10 = vld [vmem:[%s1597_s9] sm:$0x3] }
 0x498   :  { %v1133_v12 = vpop.eup %1132 }
 0x499   :  { %v365_v14 = vmul.f32 %v1133_v12, %v348_v3  ;;  %v631_v12 = vld [vmem:[%s1594_s4 + $0x10] sm:$0xff] }
 0x49b   :  { %v366_v15 = vpack.c.bf16 %v365_v14, %v364_v13  ;;  %v633_v14 = vld [vmem:[%s1594_s4 + $0x20] sm:$0xff] }
 0x49d   :  { %1040 = vmatmul.mubr.bf16.vlgmr.msra.gmra.mrb[4].mxu1 %v366_v15  ;;  %v634_v15 = vld [vmem:[%s1594_s4 + $0x28] sm:$0xff] }
 0x49e   :  { %1071 = vmatprep.mubr.msk.bf16.mxu1 %vm1159_vm0, %v1158_v0 }
 0x570   :  { %v434_v17 = vpop.f32.mrb[4].mxu1 }
 0x571   :  { %v1041_v18 = vpop.f32.mrb[5].mxu1  ;;  %v435_v20 = vadd.f32 %v876_v16, %v434_v17  ;;  %v635_v17 = vld [vmem:[%s1594_s4 + $0x30] sm:$0xff] }
 0x572   :  { %v437_v19 = vpop.f32.mrb[6].mxu1  ;;  %v636_v18 = vld [vmem:[%s1594_s4 + $0x38] sm:$0xff] }
 0x573   :  { %v438_v21 = vadd.f32 %v876_v16, %v437_v19  ;;  %v1042_v22 = vpop.f32.mrb[7].mxu1  ;;  %v647_v16 = vpack.c.bf16 %v634_v15, %v633_v14  ;;  %v648_v19 = vpack.c.bf16 %v636_v18, %v635_v17  ;;  %v816_v17 = vld [vmem:[%s1600_s10] sm:$0x3] }
 0x575   :  { %v441_v23 = vpack.c.bf16 %v438_v21, %v435_v20  ;;  %v637_v20 = vld [vmem:[%s1594_s4 + $0x40] sm:$0xff]  ;;  %v638_v21 = vld [vmem:[%s1594_s4 + $0x48] sm:$0xff] }
 0x576   :  { %v649_v22 = vpack.c.bf16 %v638_v21, %v637_v20 }
 0x577   :  { %1044 = vmatpush3.bf16.msra.mxu0 %v441_v23  ;;  %v639_v23 = vld [vmem:[%s1594_s4 + $0x50] sm:$0xff] }
 0x578   :  { %1049 = vmatprep.subr.bf16.mxu0 %v1158_v0  ;;  %v650_v25 = vpack.c.bf16 %v640_v24, %v639_v23 }
 0x57a   :  { %1046 = vmatmul.mubr.msk.bf16.vlgmr.msra.gmra.mrb[16].mxu0 %vm47_vm1, %v1240_v6 }
 0x57b   :  { %1065 = vmatprep.mubr.msk.bf16.mxu0 %vm1159_vm0, %v1158_v0  ;;  %1050 = vmatpush3.bf16.msra.mxu0 %v515_v26  ;;  %v641_v26 = vld [vmem:[%s1594_s4 + $0x60] sm:$0xff] }
 0x57c   :  { %1051 = vmatprep.subr.bf16.mxu0 %v1158_v0  ;;  %v651_v28 = vpack.c.bf16 %v642_v27, %v641_v26 }
 0x57f   :  { %1052 = vmatpush3.bf16.msra.mxu0 %v516_v29  ;;  %v643_v29 = vld [vmem:[%s1594_s4 + $0x70] sm:$0xff] }
 0x580   :  { %1053 = vmatprep.subr.bf16.mxu0 %v1158_v0  ;;  %v652_v31 = vpack.c.bf16 %v644_v30, %v643_v29 }
 0x583   :  { %1054 = vmatpush3.bf16.msra.mxu0 %v517_v32  ;;  %v1160_v32 = vmov 0  }
 0x584   :  { %1055 = vmatprep.subr.bf16.mxu0 %v1158_v0  ;;  %1109 = vset.pattern.permute.xlu0 %v1160_v32 }
 0x585   :  { %719 = vperm.xlu0 %1109, %v715_v33  }
 0x587   :  { %1056 = vmatpush3.bf16.msra.mxu0 %v518_v35 }
 0x588   :  { %1057 = vmatprep.subr.bf16.mxu0 %v1158_v0 }
 0x58b   :  { %1058 = vmatpush3.bf16.msra.mxu0 %v519_v38 }
 0x58c   :  { %1059 = vmatprep.subr.bf16.mxu0 %v1158_v0 }
 0x58f   :  { %1060 = vmatpush3.bf16.msra.mxu0 %v520_v41 }
 0x590   :  { %1061 = vmatprep.subr.bf16.mxu0 %v1158_v0 }
 0x593   :  { %1062 = vmatpush3.bf16.msra.mxu0 %v521_v44 }
 0x594   :  { %1063 = vmatprep.subr.bf16.mxu0 %v1158_v0 }
 0x597   :  { %1064 = vmatpush3.bf16.msra.mxu0 %v522_v47 }
 0x64d   :  { %v476_v48 = vpop.f32.mrb[16].mxu0 }
 0x64e   :  { %v878_v49 = vmul.f32 -1.442695, %v476_v48  ;;  %v1047_v50 = vpop.f32.mrb[17].mxu0 }
 0x64f   :  { %v479_v51 = vpop.f32.mrb[18].mxu0  ;;  %v901_v50 = vld [vmem:[%s1596_s5] ss:$0 sm:$0xff] }
 0x650   :  { %1134 = vpow2.f32 %v878_v49  ;;  %v879_v52 = vmul.f32 -1.442695, %v479_v51  ;;  %v1048_v53 = vpop.f32.mrb[19].mxu0  ;;  %v1161_v49 = vmov 0.0|0.0  }
 0x651   :  { %1102 = vmatprep.subr.bf16.mxu0 %v1161_v49 }
 0x652   :  { %1136 = vpow2.f32 %v879_v52 }
 0x65a   :  { %v1135_v54 = vpop.eup %1134 }
 0x65b   :  { %v489_v55 = vadd.f32 1.0, %v1135_v54 }
 0x65c   :  { %v1137_v56 = vpop.eup %1136 }
 0x65d   :  { %1138 = vrcp.f32 %v489_v55  ;;  %v490_v57 = vadd.f32 1.0, %v1137_v56 }
 0x65f   :  { %1140 = vrcp.f32 %v490_v57 }
 0x667   :  { %v1139_v58 = vpop.eup %1138 }
 0x668   :  { %v495_v60 = vmul.f32 %v1139_v58, %v476_v48 }
 0x669   :  { %v1141_v59 = vpop.eup %1140 }
 0x66a   :  { %v496_v61 = vmul.f32 %v1141_v59, %v479_v51 }
 0x66c   :  { %v497_v62 = vpack.c.bf16 %v496_v61, %v495_v60 }
 0x66e   :  { %1066 = vmatmul.mubr.bf16.vlgmr.msra.gmra.mrb[20].mxu0 %v497_v62 }
 0x66f   :  { %1099 = vmatprep.mubr.msk.f32.mxu0 %vm1159_vm0, %v1158_v0 }
 0x741   :  { %v565_v1 = vpop.f32.mrb[20].mxu0 }
 0x742   :  { %v1067_v2 = vpop.f32.mrb[21].mxu0  ;;  %v566_v4 = vadd.f32 %v897_v63, %v565_v1 }
 0x743   :  { %v568_v3 = vpop.f32.mrb[22].mxu0 }
 0x744   :  { %v569_v5 = vadd.f32 %v897_v63, %v568_v3  ;;  %v1068_v7 = vpop.f32.mrb[23].mxu0  ;;  %v720_v63 = vpop.permute.xlu0 %719 }
 0x746   :  { %v572_v8 = vpack.c.bf16 %v569_v5, %v566_v4 }
 0x748   :  { %1070 = vmatpush3.bf16.msra.mxu1 %v572_v8 }
 0x749   :  { %1075 = vmatprep.subr.bf16.mxu1 %v1158_v0 }
 0x74b   :  { %1072 = vmatmul.mubr.msk.bf16.vlgmr.msra.gmra.mrb[8].mxu1 %vm47_vm1, %v1240_v6  ;;  %v632_v6 = vld [vmem:[%s1594_s4 + $0x18] sm:$0xff] }
 0x74c   :  { %1091 = vmatprep.mubr.msk.bf16.mxu1 %vm1159_vm0, %v1158_v0  ;;  %1076 = vmatpush3.bf16.msra.mxu1 %v645_v11  ;;  %v646_v13 = vpack.c.bf16 %v632_v6, %v631_v12  ;;  %v16_v11 = vstv %s1598_s7  ;;  %v905_v12 = vld [vmem:[%s1599_s6] ss:$0 sm:$0xff] }
 0x74d   :  { %1077 = vmatprep.subr.bf16.mxu1 %v1158_v0  ;;  %17 = vst [vmem:[#allocation2] sm:$0x1] %v16_v11 }
 0x750   :  { %1078 = vmatpush3.bf16.msra.mxu1 %v646_v13 }
 0x751   :  { %1079 = vmatprep.subr.bf16.mxu1 %v1158_v0 }
 0x754   :  { %1080 = vmatpush3.bf16.msra.mxu1 %v647_v16  ;;  %v906_v16 = vld [vmem:[#allocation2] ss:$0 sm:$0xff] }
 0x755   :  { %1081 = vmatprep.subr.bf16.mxu1 %v1158_v0  ;;  %v823_v18 = vmul.f32 %v906_v16, %v816_v17 }
 0x758   :  { %1082 = vmatpush3.bf16.msra.mxu1 %v648_v19 }
 0x759   :  { %1083 = vmatprep.subr.bf16.mxu1 %v1158_v0 }
 0x75c   :  { %1084 = vmatpush3.bf16.msra.mxu1 %v649_v22 }
 0x75d   :  { %1085 = vmatprep.subr.bf16.mxu1 %v1158_v0 }
 0x760   :  { %1086 = vmatpush3.bf16.msra.mxu1 %v650_v25 }
 0x761   :  { %1087 = vmatprep.subr.bf16.mxu1 %v1158_v0 }
 0x764   :  { %1088 = vmatpush3.bf16.msra.mxu1 %v651_v28 }
 0x765   :  { %1089 = vmatprep.subr.bf16.mxu1 %v1158_v0  ;;  %v716_v0 = vld [vmem:[%s1595_s8 + $0x8] sm:$0xff] }
 0x766   :  { %724 = vperm.xlu0 %1109, %v716_v0  }
 0x768   :  { %1090 = vmatpush3.bf16.msra.mxu1 %v652_v31 }
 0x7e5   :  { %v725_v5 = vpop.permute.xlu0 %724 }
 0x81e   :  { %v607_v34 = vpop.f32.mrb[8].mxu1 }
 0x81f   :  { %v899_v35 = vmul.f32 -1.442695, %v607_v34  ;;  %v1073_v36 = vpop.f32.mrb[9].mxu1 }
 0x820   :  { %v610_v37 = vpop.f32.mrb[10].mxu1 }
 0x821   :  { %1142 = vpow2.f32 %v899_v35  ;;  %v900_v38 = vmul.f32 -1.442695, %v610_v37  ;;  %v1074_v39 = vpop.f32.mrb[11].mxu1 }
 0x823   :  { %1144 = vpow2.f32 %v900_v38 }
 0x82b   :  { %v1143_v40 = vpop.eup %1142 }
 0x82c   :  { %v620_v41 = vadd.f32 1.0, %v1143_v40 }
 0x82d   :  { %v1145_v42 = vpop.eup %1144 }
 0x82e   :  { %1146 = vrcp.f32 %v620_v41  ;;  %v621_v43 = vadd.f32 1.0, %v1145_v42 }
 0x830   :  { %1148 = vrcp.f32 %v621_v43 }
 0x838   :  { %v1147_v44 = vpop.eup %1146 }
 0x839   :  { %v626_v46 = vmul.f32 %v1147_v44, %v607_v34 }
 0x83a   :  { %v1149_v45 = vpop.eup %1148 }
 0x83b   :  { %v627_v47 = vmul.f32 %v1149_v45, %v610_v37 }
 0x83d   :  { %v628_v48 = vpack.c.bf16 %v627_v47, %v626_v46 }
 0x83f   :  { %1092 = vmatmul.mubr.bf16.vlgmr.msra.gmra.mrb[12].mxu1 %v628_v48 }
 0x912   :  { %v694_v51 = vpop.f32.mrb[12].mxu1 }
 0x913   :  { %v695_v52 = vadd.f32 %v901_v50, %v694_v51  ;;  %v1093_v53 = vpop.f32.mrb[13].mxu1 }
 0x914   :  { %v697_v54 = vpop.f32.mrb[14].mxu1 }
 0x915   :  { %v902_v55 = vmul.f32 -1.442695, %v695_v52  ;;  %v698_v56 = vadd.f32 %v901_v50, %v697_v54  ;;  %v1094_v57 = vpop.f32.mrb[15].mxu1 }
 0x917   :  { %1150 = vpow2.f32 %v902_v55  ;;  %v903_v58 = vmul.f32 -1.442695, %v698_v56 }
 0x919   :  { %1152 = vpow2.f32 %v903_v58 }
 0x921   :  { %v1151_v59 = vpop.eup %1150 }
 0x922   :  { %v707_v60 = vadd.f32 1.0, %v1151_v59 }
 0x923   :  { %v1153_v61 = vpop.eup %1152 }
 0x924   :  { %1154 = vrcp.f32 %v707_v60  ;;  %v708_v62 = vadd.f32 1.0, %v1153_v61 }
 0x926   :  { %1156 = vrcp.f32 %v708_v62 }
 0x92e   :  { %v1155_v1 = vpop.eup %1154 }
 0x92f   :  { %v713_v2 = vmul.f32 %v1155_v1, %v695_v52 }
 0x930   :  { %v1157_v3 = vpop.eup %1156 }
 0x931   :  { %v714_v4 = vmul.f32 %v1157_v3, %v698_v56  ;;  %v727_v7 = vmul.f32 %v720_v63, %v713_v2 }
 0x933   :  { %v728_v8 = vmul.f32 %v725_v5, %v714_v4 }
 0x935   :  { %v1103_v9 = vpack.c.bf16 %v728_v8, %v727_v7 }
 0x937   :  { %1104 = vmatpush3.bf16.msra.mxu0 %v1103_v9 }
 0x93a   :  { %1100 = vmatmul.mubr.msk.f32.vlgmr.msra.gmra.mrb[24].mxu0 %vm47_vm1, %v729_v10 }
 0xa0d   :  { %v799_v6 = vpop.f32.mrb[24].mxu0 }
 0xa0e   :  { %v810_v13 = vmul.f32 %v905_v12, %v799_v6  ;;  %v1101_v14 = vpop.f32.mrb[25].mxu0 }
 0xa10   :  { %v812_v15 = vsel %vm811_vm2, %v810_v13, 0.0 }
 0xa11   :  { %813 = vadd.xlane.f32.xlu1 %v812_v15 }
 0xa9e   :  { %v814_v19 = vpop.xlane.xlu1 %813 }
 0xa9f   :  { %v824_v20 = vadd.f32 %v823_v18, %v814_v19 }
 0xaa1   :  { %826 = vst.msk [vmem:[%s1601_s11] sm:$0x3] %vm825_vm3, %v824_v20 }

</bundles_post_ra>
